<compile_context>
chip_gen: v6e
topology: v6e:2x2x1
jax: 0.10.0
libtpu: 0.0.40
codegen_flags: <defaults>
</compile_context>

<pallas_src>
import functools
import math

import jax
import jax.numpy as jnp
from jax import lax
from jax.experimental import pallas as pl
from jax.experimental.pallas import tpu as pltpu


def _scalar_encoding_kernel(x_ref, freq_ref, phase_ref, out_ref, *, dim, k):
    """One tile: x_ref (tile_rows, k) -> out_ref (tile_rows, k*dim).

    freq_ref / phase_ref are (1, k*dim) constants (scale folded into freq,
    pi/2 phase on the cos half) so the body is: expand x along lanes, one
    multiply, one add, one fused sin, one lane-dense full-width store.
    """
    rows = x_ref.shape[0]
    row_w = k * dim

    x = x_ref[...]                                          # (rows, k) f32
    # Expand x along lanes: x_exp[r, c] = x[r, c // dim].  k is a small Python
    # int, so a short where-chain (k-1 selects) avoids vector integer div/mod.
    x_exp = jnp.broadcast_to(x[:, 0:1], (rows, row_w))
    if k > 1:
        cols = lax.broadcasted_iota(jnp.int32, (1, row_w), 1)  # single-vreg row
        for s in range(1, k):
            x_exp = jnp.where(cols >= s * dim, x[:, s:s + 1], x_exp)

    out_ref[...] = jnp.sin(x_exp * freq_ref[...] + phase_ref[...]).astype(out_ref.dtype)


def scalar_encoding(x, dim, scale=1.0, *, out_dtype=jnp.float32,
                    target_tile_bytes=4 * 1024 * 1024):
    """JAX wrapper reproducing ScalarEncoding.forward semantics."""
    assert dim % 2 == 0, "ScalarEncoding kernel requires an even `dim`"
    assert dim >= 4, "dim must be >= 4 so (dim//2 - 1) > 0 in the freq exponent"

    x_flat = jnp.reshape(x, (-1,)).astype(jnp.float32)      # x.view(-1, 1) rows
    n = x_flat.shape[0]
    half = dim // 2
    out_dtype = jnp.dtype(out_dtype)

    # ---- output-row packing: k samples per kernel row so the row is lane-dense.
    k_exact = 128 // math.gcd(dim, 128)                     # (k_exact*dim) % 128 == 0
    if dim >= 128:
        k = k_exact if k_exact <= 8 else 1
    else:
        k = k_exact if k_exact <= 32 else -(-128 // dim)    # ceil(128/dim) fallback
    row_w = k * dim
    # TODO(synk): on the fallback path row_w % 128 != 0 and the store tail is masked.

    # ---- tiling: target-sized output tiles, bounded by a double-buffered VMEM
    # budget that accounts for the lane-padded (tile_rows, k->128) input block.
    g = 16 if out_dtype.itemsize == 2 else 8                # sublane granularity
    out_row_bytes = row_w * out_dtype.itemsize
    in_row_vmem_bytes = 128 * 4                             # k<=128 lanes pad to 128, f32
    vmem_budget = 24 * 1024 * 1024                          # 2 x (in + out) blocks

    rows = -(-n // k)
    rows_g = -(-rows // g) * g
    t_max = max(g, min(target_tile_bytes // out_row_bytes,
                       vmem_budget // (2 * (out_row_bytes + in_row_vmem_bytes)))
                // g * g)
    num_tiles = max(1, -(-rows_g // t_max))
    if rows_g >= 2 * g:
        num_tiles = max(num_tiles, 2)                       # v7x: feed both TensorCores
    tile_rows = -(-(-(-rows_g // num_tiles)) // g) * g      # ceil(rows_g/num_tiles) -> mult of g
    rows_pad = num_tiles * tile_rows

    x_packed = jnp.pad(x_flat, (0, rows_pad * k - n)).reshape(rows_pad, k)

    # ---- constants (hoisted out of the kernel): freq with scale folded in,
    # +pi/2 phase on the cos half so a single fused sin covers the whole row.
    col = jnp.arange(row_w, dtype=jnp.int32) % dim
    e = jnp.where(col < half, col, col - half).astype(jnp.float32)
    freq_row = (jnp.float32(scale)
                * jnp.exp(e * jnp.float32(-math.log(scale) / (half - 1)))
                ).reshape(1, row_w)
    phase_row = jnp.where(col < half, jnp.float32(0.0),
                          jnp.float32(0.5 * math.pi)).reshape(1, row_w)

    out_elems = rows_pad * row_w
    cost = pl.CostEstimate(
        flops=int((2 + max(0, k - 1)) * out_elems),          # mul + add + selects
        transcendentals=int(out_elems),                      # one fused sin / element
        bytes_accessed=int(rows_pad * k * 4 + 2 * row_w * 4
                           + out_elems * out_dtype.itemsize),
    )

    kernel = functools.partial(_scalar_encoding_kernel, dim=dim, k=k)
    out = pl.pallas_call(
        kernel,
        out_shape=jax.ShapeDtypeStruct((rows_pad, row_w), out_dtype),
        grid=(num_tiles,),
        in_specs=[
            pl.BlockSpec((tile_rows, k), lambda i: (i, 0)),
            pl.BlockSpec((1, row_w), lambda i: (0, 0)),      # freq (fetched once)
            pl.BlockSpec((1, row_w), lambda i: (0, 0)),      # phase (fetched once)
        ],
        out_specs=pl.BlockSpec((tile_rows, row_w), lambda i: (i, 0)),
        compiler_params=pltpu.CompilerParams(
            dimension_semantics=("parallel",),               # v7x: shard tiles over 2 TCs
            vmem_limit_bytes=32 * 1024 * 1024),
        cost_estimate=cost,
    )(x_packed, freq_row, phase_row)

    # (rows_pad, k*dim) row-major is exactly (rows_pad*k, dim); slice only if padded.
    out = out.reshape(rows_pad * k, dim)
    if rows_pad * k != n:
        # TODO(synk): unaligned n costs one extra output copy; consumers that can
        # tolerate padded rows should take the full buffer + valid length instead.
        out = out[:n]
    return out


def scalar_encoding_ref(x, dim, scale=1.0):
    """Pure-JAX reference (mirrors the PyTorch forward)."""
    scaled_x = (x * scale).reshape(-1, 1).astype(jnp.float32)
    half = dim // 2
    freqs = jnp.exp(-jnp.arange(0, half, dtype=jnp.float32)
                    * (math.log(scale) / (half - 1)))
    args = scaled_x * freqs[None, :]
    return jnp.concatenate([jnp.sin(args), jnp.cos(args)], axis=-1)


if __name__ == "__main__":
    key = jax.random.PRNGKey(0)
    key_small, key_big = jax.random.split(key)

    dim = 32
    scale = 1000.0

    # Small-scale scalar feature (0 .. 0.1), as described in the module docstring.
    batch = 8
    x = jax.random.uniform(key_small, (batch,), dtype=jnp.float32,
                           minval=0.0, maxval=0.1)
    out = jax.block_until_ready(scalar_encoding(x, dim, scale))
    ref = scalar_encoding_ref(x, dim, scale)
    assert out.shape == (batch, dim), out.shape
    # Tolerance note: folding `scale` into freq and computing cos as sin(t+pi/2)
    # are exact transforms but differ from the reference by a few f32 ulps at
    # |arg| ~ 100, so allow slightly more than pure f32 roundoff.
    assert jnp.allclose(out, ref, atol=1e-4, rtol=1e-4), \
        float(jnp.max(jnp.abs(out - ref)))

    # Larger run: exercises the multi-tile "parallel" grid, the constant-input
    # blocks, and the slice-free (n == rows_pad*k) return path.
    n_big = 40000
    x_big = jax.random.uniform(key_big, (n_big,), dtype=jnp.float32,
                               minval=0.0, maxval=0.1)
    out_big = jax.block_until_ready(scalar_encoding(x_big, dim, scale))
    ref_big = scalar_encoding_ref(x_big, dim, scale)
    assert out_big.shape == (n_big, dim), out_big.shape
    assert jnp.allclose(out_big, ref_big, atol=2e-4, rtol=2e-4), \
        float(jnp.max(jnp.abs(out_big - ref_big)))

    print("KERNEL_OK")
</pallas_src>

<mosaic_0001>
module attributes {stable_mosaic.version = 11 : i64} {
  func.func @_scalar_encoding_kernel(%arg0: i32, %arg1: memref<8x4xf32, #tpu.memory_space<vmem>>, %arg2: memref<1x128xf32, #tpu.memory_space<vmem>>, %arg3: memref<1x128xf32, #tpu.memory_space<vmem>>, %arg4: memref<8x128xf32, #tpu.memory_space<vmem>>) attributes {dimension_semantics = [#tpu.dimension_semantics<parallel>], iteration_bounds = array<i64: 1>, scalar_prefetch = 0 : i64, scratch_operands = 0 : i64, tpu.core_type = #tpu.core_type<tc>, window_params = [{transform_indices = @transform_0, window_bounds = array<i64: 8, 4>}, {pipeline_mode = #tpu.pipeline_mode<synchronous>, transform_indices = @transform_1, window_bounds = array<i64: 1, 128>}, {pipeline_mode = #tpu.pipeline_mode<synchronous>, transform_indices = @transform_2, window_bounds = array<i64: 1, 128>}, {transform_indices = @transform_3, window_bounds = array<i64: 8, 128>}]} {
    %c0 = arith.constant 0 : index
    %c0_0 = arith.constant 0 : index
    %0 = vector.load %arg1[%c0, %c0_0] : memref<8x4xf32, #tpu.memory_space<vmem>>, vector<8x4xf32>
    %1 = vector.extract_strided_slice %0 {offsets = [0, 0], sizes = [8, 1], strides = [1, 1]} : vector<8x4xf32> to vector<8x1xf32>
    %2 = vector.shape_cast %1 : vector<8x1xf32> to vector<8x1xf32>
    %3 = vector.broadcast %2 : vector<8x1xf32> to vector<8x128xf32>
    %4 = tpu.iota {dimensions = array<i32: 1>} : vector<1x128xi32>
    %c32_i32 = arith.constant 32 : i32
    %5 = vector.broadcast %c32_i32 : i32 to vector<1x128xi32>
    %6 = arith.cmpi sge, %4, %5 : vector<1x128xi32>
    %7 = vector.extract_strided_slice %0 {offsets = [0, 1], sizes = [8, 1], strides = [1, 1]} : vector<8x4xf32> to vector<8x1xf32>
    %8 = vector.shape_cast %6 : vector<1x128xi1> to vector<1x128xi1>
    %9 = vector.broadcast %8 : vector<1x128xi1> to vector<8x128xi1>
    %10 = vector.shape_cast %7 : vector<8x1xf32> to vector<8x1xf32>
    %11 = vector.broadcast %10 : vector<8x1xf32> to vector<8x128xf32>
    %12 = arith.select %9, %11, %3 : vector<8x128xi1>, vector<8x128xf32>
    %c64_i32 = arith.constant 64 : i32
    %13 = vector.broadcast %c64_i32 : i32 to vector<1x128xi32>
    %14 = arith.cmpi sge, %4, %13 : vector<1x128xi32>
    %15 = vector.extract_strided_slice %0 {offsets = [0, 2], sizes = [8, 1], strides = [1, 1]} : vector<8x4xf32> to vector<8x1xf32>
    %16 = vector.shape_cast %14 : vector<1x128xi1> to vector<1x128xi1>
    %17 = vector.broadcast %16 : vector<1x128xi1> to vector<8x128xi1>
    %18 = vector.shape_cast %15 : vector<8x1xf32> to vector<8x1xf32>
    %19 = vector.broadcast %18 : vector<8x1xf32> to vector<8x128xf32>
    %20 = arith.select %17, %19, %12 : vector<8x128xi1>, vector<8x128xf32>
    %c96_i32 = arith.constant 96 : i32
    %21 = vector.broadcast %c96_i32 : i32 to vector<1x128xi32>
    %22 = arith.cmpi sge, %4, %21 : vector<1x128xi32>
    %23 = vector.extract_strided_slice %0 {offsets = [0, 3], sizes = [8, 1], strides = [1, 1]} : vector<8x4xf32> to vector<8x1xf32>
    %24 = vector.shape_cast %22 : vector<1x128xi1> to vector<1x128xi1>
    %25 = vector.broadcast %24 : vector<1x128xi1> to vector<8x128xi1>
    %26 = vector.shape_cast %23 : vector<8x1xf32> to vector<8x1xf32>
    %27 = vector.broadcast %26 : vector<8x1xf32> to vector<8x128xf32>
    %28 = arith.select %25, %27, %20 : vector<8x128xi1>, vector<8x128xf32>
    %c0_1 = arith.constant 0 : index
    %c0_2 = arith.constant 0 : index
    %29 = vector.load %arg2[%c0_1, %c0_2] : memref<1x128xf32, #tpu.memory_space<vmem>>, vector<1x128xf32>
    %30 = vector.broadcast %29 : vector<1x128xf32> to vector<8x128xf32>
    %31 = arith.mulf %28, %30 : vector<8x128xf32>
    %c0_3 = arith.constant 0 : index
    %c0_4 = arith.constant 0 : index
    %32 = vector.load %arg3[%c0_3, %c0_4] : memref<1x128xf32, #tpu.memory_space<vmem>>, vector<1x128xf32>
    %33 = vector.broadcast %32 : vector<1x128xf32> to vector<8x128xf32>
    %34 = arith.addf %31, %33 : vector<8x128xf32>
    %35 = math.sin %34 : vector<8x128xf32>
    %c0_5 = arith.constant 0 : index
    %c0_6 = arith.constant 0 : index
    %36 = vector.load %arg4[%c0_5, %c0_6] : memref<8x128xf32, #tpu.memory_space<vmem>>, vector<8x128xf32>
    tpu.vector_store %arg4[%c0_5, %c0_6], %35 {strides = array<i32>} : memref<8x128xf32, #tpu.memory_space<vmem>>, vector<8x128xf32>,
    return
  }
  func.func @transform_0(%arg0: i32) -> (i32, i32) {
    %c0_i32 = arith.constant 0 : i32
    %c0_i32_0 = arith.constant 0 : i32
    return %arg0, %c0_i32 : i32, i32
  }
  func.func @transform_1(%arg0: i32) -> (i32, i32) {
    %c0_i32 = arith.constant 0 : i32
    %c0_i32_0 = arith.constant 0 : i32
    %c0_i32_1 = arith.constant 0 : i32
    return %c0_i32, %c0_i32_0 : i32, i32
  }
  func.func @transform_2(%arg0: i32) -> (i32, i32) {
    %c0_i32 = arith.constant 0 : i32
    %c0_i32_0 = arith.constant 0 : i32
    %c0_i32_1 = arith.constant 0 : i32
    return %c0_i32, %c0_i32_0 : i32, i32
  }
  func.func @transform_3(%arg0: i32) -> (i32, i32) {
    %c0_i32 = arith.constant 0 : i32
    %c0_i32_0 = arith.constant 0 : i32
    return %arg0, %c0_i32 : i32, i32
  }
}

</mosaic_0001>

<bundles_post_ra>
// kernel: tpu_custom_call.1
= control target key start
LH: loop header
LB: loop body
LE: loop exit
PB: predicated region body
PF: predicated region fallthrough
CT: control target
= control target key end

     0   :  { %v234_v1 = vmov 0   ;;  %v235_v2 = vmov 2   ;;  %s298_s0 = inlined_call_operand.vmem [shape: f32[8,4], index: 0, kind: input, shape index: {}]   ;;  %s299_s1 = inlined_call_operand.vmem [shape: f32[1,128], index: 1, kind: input, shape index: {}]   ;;  %s300_s2 = inlined_call_operand.vmem [shape: f32[1,128], index: 2, kind: input, shape index: {}]   ;;  %s301_s3 = inlined_call_operand.hbm [shape: f32[8,128], index: 3, kind: output, shape index: {}]  }
   0x1   :  { %v15_v0 = vld [vmem:[%s298_s0] sm:$0xff]  ;;  %203 = vset.pattern.permute.xlu0 %v234_v1  ;;  %205 = vset.pattern.permute.xlu1 %v235_v2 }
   0x2   :  { %8 = vsyncpa [#allocation3], 0  ;;  %18 = vperm.xlu0 %203, %v15_v0   ;;  %35 = vperm.xlu1 %205, %v15_v0   ;;  %v236_v3 = vmov 1   ;;  %v237_v4 = vmov 3   ;;  %v21_v5 = vlaneseq  ;;  %v182_v12 = vld [vmem:[%s299_s1] ss:$0 sm:$0xff] }
   0x3   :  { %v183_v14 = vld [vmem:[%s300_s2] ss:$0 sm:$0xff]  ;;  %v238_v28 = vmov 683565275   ;;  %v239_v30 = vmov 2475754826  }
   0x4   :  { %v22_v6 = vand.u32 127, %v21_v5  ;;  %v240_v33 = vmov 2131351028   ;;  %v241_v36 = vmov 2102212464   ;;  %s244_s1 = smov [#allocation2]  }
   0x5   :  { %v242_v39 = vmov 920167782   ;;  %v243_v42 = vmov 1326507024   ;;  %s174_s2 = sshll.u32 %s244_s1, 4  ;;  %s175_s2 = int_to_ptr.vmem [resolvable:$true] %s174_s2 }
   0x6   :  { %204 = vset.pattern.permute.xlu0 %v236_v3  ;;  %206 = vset.pattern.permute.xlu1 %v237_v4  ;;  %vm23_vm0 = vcmp.ge.s32.totalorder %v22_v6, 32  ;;  %vm31_vm1 = vcmp.ge.s32.totalorder %v22_v6, 64  ;;  %vm39_vm2 = vcmp.ge.s32.totalorder %v22_v6, 96  ;;  %s212_s17 = scalar_lea.vmem %s175_s2, 128  ;;  %p217_p1 = scmp.lt.s32.totalorder %s175_s2, %s175_s2 }
   0x7   :  { %27 = vperm.xlu0 %204, %v15_v0   ;;  %43 = vperm.xlu1 %206, %v15_v0   ;;  %p213_p0 = scmp.ne.s32.totalorder %s175_s2, %s212_s17  ;;  %p218_p2 = scmp.lt.s32.totalorder %s212_s17, %s212_s17 }
   0x9   :  { %p219_p3 = por %p218_p2, %p217_p1 }
   0xb   :  { %207 = vset.pattern.permute.xlu0 %v237_v4  ;;  %p220_p4 = pnand %p219_p3, %p213_p0 }
  0x7d   :  { %v19_v7 = vpop.permute.xlu0 %18  ;;  %v36_v8 = vpop.permute.xlu1 %35 }
  0x82   :  { %v28_v9 = vpop.permute.xlu0 %27  ;;  %v44_v10 = vpop.permute.xlu1 %43 }
  0x83   :  { %v30_v11 = vsel %vm23_vm0, %v28_v9, %v19_v7 }
  0x84   :  { %v38_v13 = vsel %vm31_vm1, %v36_v8, %v30_v11 }
  0x85   :  { %v46_v15 = vsel %vm39_vm2, %v44_v10, %v38_v13 }
  0x86   :  { %v54_v16 = vmul.f32 %v182_v12, %v46_v15 }
  0x88   :  { %v274_v17 = vadd.f32 %v183_v14, %v54_v16 }
  0x8a   :  { %v66_v18 = vand.u32 2139095040, %v274_v17  ;;  %v63_v22 = vand.u32 2147483647, %v274_v17  ;;  %vm65_vm10 = vcmp.lt.s32.totalorder %v274_v17, 0  ;;  %vm155_vm15 = vweird.f32 %v274_v17 }
  0x8c   :  { %v67_v19 = vshrl.u32 %v66_v18, 23  ;;  %v70_v26 = vand.u32 8388607, %v63_v22  ;;  %vm64_vm11 = vcmp.le.f32.partialorder %v63_v22, 0.7853982 }
  0x8e   :  { %v184_v20 = vadd.s32 4294967169, %v67_v19  ;;  %v71_v44 = vor.u32 8388608, %v70_v26 }
  0x90   :  { %v73_v21 = vadd.s32 1, %v184_v20  ;;  %v111_v58 = vshll.u32 %v71_v44, 8 }
  0x92   :  { %vm74_vm3 = vcmp.gt.s32.totalorder %v73_v21, 0 }
  0x93   :  { %v75_v23 = vsel %vm74_vm3, %v73_v21, 0 }
  0x94   :  { %v77_v24 = vand.u32 31, %v75_v23  ;;  %v76_v27 = vshrl.u32 %v75_v23, 5 }
  0x96   :  { %v78_v25 = vsub.s32 32, %v77_v24  ;;  %v80_v29 = vshll.u32 %v238_v28, %v77_v24  ;;  %v83_v31 = vshll.u32 %v239_v30, %v77_v24  ;;  %v86_v35 = vshll.u32 %v240_v33, %v77_v24 }
  0x97   :  { %v89_v38 = vshll.u32 %v241_v36, %v77_v24  ;;  %v92_v41 = vshll.u32 %v242_v39, %v77_v24  ;;  %vm95_vm4 = vcmp.lt.s32.totalorder %v76_v27, 1  ;;  %vm98_vm5 = vcmp.lt.s32.totalorder %v76_v27, 4 }
  0x98   :  { %v81_v32 = vshrl.u32 %v239_v30, %v78_v25  ;;  %v84_v34 = vshrl.u32 %v240_v33, %v78_v25  ;;  %v87_v37 = vshrl.u32 %v241_v36, %v78_v25  ;;  %v90_v40 = vshrl.u32 %v242_v39, %v78_v25 }
  0x99   :  { %v93_v43 = vshrl.u32 %v243_v42, %v78_v25  ;;  %v79_v53 = vshrl.u32 %v238_v28, %v78_v25  ;;  %vm97_vm6 = vcmp.lt.s32.totalorder %v76_v27, 3  ;;  %vm96_vm7 = vcmp.lt.s32.totalorder %v76_v27, 2 }
  0x9a   :  { %v82_v45 = vor.u32 %v81_v32, %v80_v29  ;;  %v85_v46 = vor.u32 %v84_v34, %v83_v31  ;;  %v88_v47 = vor.u32 %v87_v37, %v86_v35  ;;  %v91_v48 = vor.u32 %v90_v40, %v89_v38 }
  0x9b   :  { %v94_v49 = vor.u32 %v93_v43, %v92_v41 }
  0x9c   :  { %v100_v50 = vsel %vm98_vm5, %v88_v47, 2102212464  ;;  %v103_v51 = vsel %vm95_vm4, %v82_v45, %v85_v46  ;;  %v107_v52 = vsel %vm95_vm4, %v85_v46, %v88_v47  ;;  %v104_v54 = vsel %vm98_vm5, %v91_v48, 920167782 }
  0x9d   :  { %v108_v55 = vsel %vm98_vm5, %v94_v49, 1326507024  ;;  %v105_v56 = vsel %vm97_vm6, %v88_v47, %v104_v54  ;;  %v99_v59 = vsel %vm95_vm4, %v79_v53, %v82_v45  ;;  %v101_v60 = vsel %vm97_vm6, %v85_v46, %v100_v50 }
  0x9e   :  { %v109_v57 = vsel %vm97_vm6, %v91_v48, %v108_v55  ;;  %v106_v61 = vsel %vm96_vm7, %v103_v51, %v105_v56  ;;  %v102_v3 = vsel %vm96_vm7, %v99_v59, %v101_v60 }
  0x9f   :  { %v110_v62 = vsel %vm96_vm7, %v107_v52, %v109_v57  ;;  %v283_v1 = vmul.u32.u64.low %v111_v58, %v106_v61  ;;  %v284_v2 = vmul.u32.u64.high %v111_v58, %v106_v61, %v283_v1  ;;  %v118_v5 = vmul.u32 %v111_v58, %v102_v3 }
  0xa0   :  { %v280_v63 = vmul.u32.u64.low %v111_v58, %v110_v62  ;;  %v281_v0 = vmul.u32.u64.high %v111_v58, %v110_v62, %v280_v63 }
  0xa1   :  { %v121_v4 = vadd.s32 1, %v284_v2 }
  0xa2   :  { %vm120_vm8 = vc.u32 %v281_v0, %v283_v1  ;;  %v119_v18 = vadd.s32 %v283_v1, %v281_v0 }
  0xa3   :  { %v122_v6 = vsel %vm120_vm8, %v121_v4, %v284_v2 }
  0xa4   :  { %v123_v7 = vadd.s32 %v122_v6, %v118_v5 }
  0xa6   :  { %v124_v8 = vadd.s32 536870912, %v123_v7 }
  0xa8   :  { %v125_v9 = vshrl.u32 %v124_v8, 30 }
  0xaa   :  { %v126_v10 = vshll.u32 %v125_v9, 30  ;;  %v149_v32 = vsub.s32 4, %v125_v9 }
  0xac   :  { %v127_v11 = vsub.s32 %v123_v7, %v126_v10  ;;  %v150_v35 = vsel %vm65_vm10, %v149_v32, %v125_v9 }
  0xad   :  { %v152_v36 = vsel %vm64_vm11, 0, %v150_v35 }
  0xae   :  { %v129_v12 = vsub.s32 0, %v127_v11  ;;  %v156_v37 = vadd.s32 3, %v152_v36 }
  0xb0   :  { %v185_v13 = vmin.u32 %v129_v12, %v127_v11  ;;  %v157_v38 = vand.u32 3, %v156_v37 }
  0xb2   :  { %v131_v14 = vclz %v185_v13  ;;  %vm162_vm12 = vcmp.eq.s32.totalorder %v157_v38, 2  ;;  %vm159_vm13 = vcmp.eq.s32.totalorder %v157_v38, 0  ;;  %vm158_vm14 = vcmp.lt.s32.totalorder %v157_v38, 2 }
  0xb4   :  { %v186_v15 = vadd.s32 4294967294, %v131_v14 }
  0xb6   :  { %vm187_vm9 = vcmp.lt.s32.totalorder %v186_v15, 0 }
  0xb7   :  { %v134_v16 = vsel %vm187_vm9, 0, %v186_v15 }
  0xb8   :  { %v135_v19 = vsub.s32 32, %v134_v16  ;;  %v139_v20 = vsub.s32 4294967266, %v134_v16  ;;  %v136_v21 = vshll.u32 %v127_v11, %v134_v16 }
  0xba   :  { %v137_v23 = vshrl.u32 %v119_v18, %v135_v19  ;;  %v140_v24 = vadd.s32 127, %v139_v20 }
  0xbc   :  { %v138_v25 = vor.u32 %v137_v23, %v136_v21  ;;  %v141_v26 = vshll.u32 %v140_v24, 23 }
  0xbe   :  { %v142_v27 = vor.u32 4788187, %v141_v26  ;;  %v145_v29 = vcvt.s32.f32 %v138_v25 }
  0xc0   :  { %v143_v28 = vand.u32 2147483647, %v142_v27 }
  0xc2   :  { %v146_v30 = vmul.f32 %v145_v29, %v143_v28 }
  0xc4   :  { %v147_v31 = vxor.u32 2147483648, %v146_v30 }
  0xc6   :  { %v148_v33 = vsel %vm65_vm10, %v147_v31, %v146_v30 }
  0xc7   :  { %v151_v34 = vsel %vm64_vm11, %v274_v17, %v148_v33 }
  0xc8   :  { %208 = vcosq.f32 %v151_v34 }
  0xc9   :  { %210 = vsinq.f32 %v151_v34 }
  0xd5   :  { %v209_v39 = vpop.eup %208 }
  0xd6   :  { %v211_v40 = vpop.eup %210  ;;  %v163_v41 = vxor.u32 2147483648, %v209_v39 }
  0xd7   :  { %v160_v42 = vxor.u32 2147483648, %v211_v40 }
  0xd8   :  { %v164_v43 = vsel %vm162_vm12, %v163_v41, %v211_v40 }
  0xd9   :  { %v161_v22 = vsel %vm159_vm13, %v209_v39, %v160_v42 }
  0xda   :  { %v165_v44 = vsel %vm158_vm14, %v161_v22, %v164_v43 }
  0xdb   :  { %v166_v45 = vsel %vm155_vm15, nan, %v165_v44 }
  0xdc   :  { %167 = vst [vmem:[#allocation2] sm:$0xff] %v166_v45 }
  0xdd   :  { %223 = shalt.err (!%p220_p4)
}
  0xde   :  { %177 = dma.vmem_to_hbm [thread:$0]  %s175_s2, 128, %s301_s3, [#allocation3]  }
  0xdf   :  { %232 = dma.done.wait [#allocation3], 128  }
  0xe0   :  { %233 = vsyncadd [#allocation3], 4294967168 }
  0xe1   :  { %181 = vsyncpa [#allocation3], 1 }

</bundles_post_ra>
